<compile_context>
chip_gen: v6e
topology: v6e:2x2x1
jax: 0.10.0
libtpu: 0.0.40
codegen_flags: <defaults>
</compile_context>

<pallas_src>
import jax
import jax.numpy as jnp
from jax.experimental import pallas as pl
from jax.experimental.pallas import tpu as pltpu


def _decoder_linear_kernel(x_ref, w_ref, b_ref, o_ref):
    """x_ref: (TN, D); w_ref: (D, C); b_ref: (1, C) f32; o_ref: (C, TN)."""
    # Canonical MXU matmul (no relayout of the big x tile); f32 accumulation.
    y = jnp.dot(x_ref[...], w_ref[...], preferred_element_type=jnp.float32)  # (TN, C)
    y = y + b_ref[...]                                                       # f32 bias
    # Transpose only the small (TN, C) result; token axis -> lanes so the
    # (C, TN) output block is stored full-width (unmasked vst).
    o_ref[...] = jnp.transpose(y).astype(o_ref.dtype)


_X_BLOCK_BYTE_TARGET = 4 * 1024 * 1024  # ~2-4 MiB of x per grid step


def _pick_token_tile(n, d, itemsize):
    """Largest lane-aligned token tile whose x-block stays under the byte target."""
    if n < 128:
        return n  # full-extent block (always legal) -- tiny-N fallback
    n_lane = ((n + 127) // 128) * 128
    for cand in (4096, 2048, 1024, 512, 256, 128):
        if cand <= n_lane and n_lane % cand == 0 and cand * d * itemsize <= _X_BLOCK_BYTE_TARGET:
            return cand
    return 128


def decoder_linear_head(x, w, b, *, out_dtype=None):
    """x: (B, N, D), w: (D, C), b: (C,)  ->  (B, C, N)  (transposed head output)."""
    B, N, D = x.shape
    C = w.shape[1]
    out_dtype = x.dtype if out_dtype is None else out_dtype

    # Weight / bias are tiny and resident across all grid steps; match the
    # matmul dtype to x so the big x stream is never cast or copied.
    w_k = w.astype(x.dtype)
    b_k = b.reshape(1, C).astype(jnp.float32)

    x_itemsize = jnp.dtype(x.dtype).itemsize
    out_itemsize = jnp.dtype(out_dtype).itemsize
    TN = _pick_token_tile(N, D, x_itemsize)
    grid = (B, pl.cdiv(N, TN))
    # TODO(synk): on v7x, if B * cdiv(N, TN) < ~8, fold several batch rows per
    # grid step (block (TB, TN, D) + batched einsum) so both TensorCores get
    # multiple pipelined steps instead of shrinking TN.

    cost = pl.CostEstimate(
        flops=2 * B * N * D * C,
        transcendentals=0,
        bytes_accessed=(B * N * D * x_itemsize
                        + D * C * jnp.dtype(w_k.dtype).itemsize
                        + C * 4
                        + B * C * N * out_itemsize),
    )

    return pl.pallas_call(
        _decoder_linear_kernel,
        out_shape=jax.ShapeDtypeStruct((B, C, N), out_dtype),
        grid_spec=pltpu.PrefetchScalarGridSpec(
            num_scalar_prefetch=0,
            grid=grid,
            in_specs=[
                # (None, TN, D): kernel sees a 2-D (TN, D) token tile.
                pl.BlockSpec((None, TN, D), lambda bi, ni: (bi, ni, 0)),
                # Full weight / bias, resident across all grid steps.
                pl.BlockSpec((D, C), lambda bi, ni: (0, 0)),
                pl.BlockSpec((1, C), lambda bi, ni: (0, 0)),
            ],
            out_specs=pl.BlockSpec((None, C, TN), lambda bi, ni: (bi, 0, ni)),
        ),
        compiler_params=pltpu.CompilerParams(
            # Both axes independent -> megacore sharding on v7x, neutral elsewhere.
            dimension_semantics=("parallel", "parallel"),
            vmem_limit_bytes=32 * 1024 * 1024,
        ),
        cost_estimate=cost,
    )(x, w_k, b_k)


def decoder_linear_forward(x, w, b, im_size, patch_size):
    """Full DecoderLinear.forward.  x: (B, N, D) -> (B, n_cls, H//p, W//p)."""
    H, W = im_size
    GS = H // patch_size
    WS = W // patch_size
    y = decoder_linear_head(x, w, b)      # (B, C, N)
    B, C, N = y.shape
    assert N == GS * WS, (N, GS, WS)
    # 'b (h w) c -> b c h w' is a free reshape (kernel output already C-major).
    return y.reshape(B, C, GS, WS)


if __name__ == "__main__":
    def _reference(x, w, b, im_size, patch_size):
        H, W = im_size
        GS, WS = H // patch_size, W // patch_size
        y = jnp.einsum("bnd,dc->bnc", x, w,
                       precision=jax.lax.Precision.HIGHEST) + b
        B, N, C = y.shape
        return y.reshape(B, GS, WS, C).transpose(0, 3, 1, 2)

    key = jax.random.PRNGKey(0)

    configs = [
        # (B, d_encoder, n_cls, patch_size, im_size)
        (2, 32, 8, 4, (16, 16)),   # N = 16  : tiny, full-extent token block
        (2, 32, 8, 1, (14, 14)),   # N = 196 : non-128-multiple -> masked tail tile
    ]
    for idx, (B, D, C, patch_size, im_size) in enumerate(configs):
        key, kx, kw, kb = jax.random.split(key, 4)
        GS = im_size[0] // patch_size
        WS = im_size[1] // patch_size
        N = GS * WS

        x = jax.random.normal(kx, (B, N, D), dtype=jnp.float32)
        # nn.Linear(d_encoder, n_cls): weight (C, D), bias (C,).
        w_torch = jax.random.normal(kw, (C, D), dtype=jnp.float32) * 0.02
        b_torch = jax.random.normal(kb, (C,), dtype=jnp.float32) * 0.02
        w = jnp.transpose(w_torch)          # (D, C) so head is x @ w + b

        out = decoder_linear_forward(x, w, b_torch, im_size, patch_size)
        out = jax.block_until_ready(out)

        ref = _reference(x, w, b_torch, im_size, patch_size)
        assert out.shape == (B, C, GS, WS), (out.shape, (B, C, GS, WS))
        err = float(jnp.max(jnp.abs(out.astype(jnp.float32) - ref)))
        assert err < 1e-2, f"config {idx}: max abs err {err}"

    print("KERNEL_OK")
</pallas_src>

<mosaic_0001>
module attributes {stable_mosaic.version = 11 : i64} {
  func.func @_decoder_linear_kernel(%arg0: i32, %arg1: i32, %arg2: memref<1x16x32xf32, #tpu.memory_space<vmem>>, %arg3: memref<32x8xf32, #tpu.memory_space<vmem>>, %arg4: memref<1x8xf32, #tpu.memory_space<vmem>>, %arg5: memref<1x8x16xf32, #tpu.memory_space<vmem>>) attributes {dimension_semantics = [#tpu.dimension_semantics<parallel>, #tpu.dimension_semantics<parallel>], iteration_bounds = array<i64: 2, 1>, scalar_prefetch = 0 : i64, scratch_operands = 0 : i64, tpu.core_type = #tpu.core_type<tc>, window_params = [{transform_indices = @transform_0, window_bounds = array<i64: 1, 16, 32>}, {pipeline_mode = #tpu.pipeline_mode<synchronous>, transform_indices = @transform_1, window_bounds = array<i64: 32, 8>}, {pipeline_mode = #tpu.pipeline_mode<synchronous>, transform_indices = @transform_2, window_bounds = array<i64: 1, 8>}, {transform_indices = @transform_3, window_bounds = array<i64: 1, 8, 16>}]} {
    %c0 = arith.constant 0 : index
    %c0_0 = arith.constant 0 : index
    %c0_1 = arith.constant 0 : index
    %0 = vector.load %arg2[%c0, %c0_0, %c0_1] : memref<1x16x32xf32, #tpu.memory_space<vmem>>, vector<1x16x32xf32>
    %1 = vector.shape_cast %0 : vector<1x16x32xf32> to vector<16x32xf32>
    %c0_2 = arith.constant 0 : index
    %c0_3 = arith.constant 0 : index
    %2 = vector.load %arg3[%c0_2, %c0_3] : memref<32x8xf32, #tpu.memory_space<vmem>>, vector<32x8xf32>
    %cst = arith.constant dense<0.000000e+00> : vector<16x8xf32>
    %3 = tpu.matmul %1, %2, %cst {dimension_numbers = #tpu.dot_dimension_numbers<[1], [0], [0], [1], [0, 0, 1, 1], [], []>} : vector<16x32xf32>, vector<32x8xf32>, vector<16x8xf32> -> vector<16x8xf32>
    %c0_4 = arith.constant 0 : index
    %c0_5 = arith.constant 0 : index
    %4 = vector.load %arg4[%c0_4, %c0_5] : memref<1x8xf32, #tpu.memory_space<vmem>>, vector<1x8xf32>
    %5 = vector.broadcast %4 : vector<1x8xf32> to vector<16x8xf32>
    %6 = arith.addf %3, %5 : vector<16x8xf32>
    %7 = tpu.transpose %6, [1, 0] : vector<16x8xf32> -> vector<8x16xf32>
    %c0_6 = arith.constant 0 : index
    %c0_7 = arith.constant 0 : index
    %c0_8 = arith.constant 0 : index
    %8 = vector.load %arg5[%c0_6, %c0_7, %c0_8] : memref<1x8x16xf32, #tpu.memory_space<vmem>>, vector<1x8x16xf32>
    %9 = vector.shape_cast %8 : vector<1x8x16xf32> to vector<8x16xf32>
    %10 = vector.shape_cast %7 : vector<8x16xf32> to vector<1x8x16xf32>
    tpu.vector_store %arg5[%c0_6, %c0_7, %c0_8], %10 {strides = array<i32>} : memref<1x8x16xf32, #tpu.memory_space<vmem>>, vector<1x8x16xf32>,
    return
  }
  func.func @transform_0(%arg0: i32, %arg1: i32) -> (i32, i32, i32) {
    %c0_i32 = arith.constant 0 : i32
    %c0_i32_0 = arith.constant 0 : i32
    return %arg0, %arg1, %c0_i32 : i32, i32, i32
  }
  func.func @transform_1(%arg0: i32, %arg1: i32) -> (i32, i32) {
    %c0_i32 = arith.constant 0 : i32
    %c0_i32_0 = arith.constant 0 : i32
    %c0_i32_1 = arith.constant 0 : i32
    return %c0_i32, %c0_i32_0 : i32, i32
  }
  func.func @transform_2(%arg0: i32, %arg1: i32) -> (i32, i32) {
    %c0_i32 = arith.constant 0 : i32
    %c0_i32_0 = arith.constant 0 : i32
    %c0_i32_1 = arith.constant 0 : i32
    return %c0_i32, %c0_i32_0 : i32, i32
  }
  func.func @transform_3(%arg0: i32, %arg1: i32) -> (i32, i32, i32) {
    %c0_i32 = arith.constant 0 : i32
    %c0_i32_0 = arith.constant 0 : i32
    return %arg0, %c0_i32, %arg1 : i32, i32, i32
  }
}

</mosaic_0001>

<bundles_post_ra>
// kernel: tpu_custom_call.1
= control target key start
LH: loop header
LB: loop body
LE: loop exit
PB: predicated region body
PF: predicated region fallthrough
CT: control target
= control target key end

     0   :  { %8 = vsyncpa [#allocation3], 0  ;;  %s725_s0 = inlined_call_operand.vmem [shape: f32[2,16,32], index: 0, kind: input, shape index: {}]   ;;  %s726_s1 = inlined_call_operand.vmem [shape: f32[32,8], index: 1, kind: input, shape index: {}]   ;;  %s727_s2 = inlined_call_operand.vmem [shape: f32[1,8], index: 2, kind: input, shape index: {}]   ;;  %s728_s3 = inlined_call_operand.hbm [shape: f32[2,8,16], index: 3, kind: output, shape index: {}]  }
   0x1   :  { %10 = vsyncpa [#allocation3 + $0x1], 0  ;;  %s605_s12 = smov 0   ;;  %s607_s13 = smov 0  }
   0x2   :  { %s609_s14 = smov 0   ;;  %s611_s15 = smov 0  }
   0x3   :  { %s613_s16 = smov 0   ;;  %s615_s17 = smov 0  }
   0x4 LB: > { %s417_s18 = sadd.s32 4294967295, %s582_s17   ;;  %s418_s19 = sadd.s32 4294967294, %s582_s17   ;;  %s582_s17 = sphi %s615_s17, %s16_s17   ;;  %s578_s16 = sphi %s613_s16, %s735_s16   ;;  %s574_s15 = sphi %s611_s15, %s734_s15   ;;  %s570_s14 = sphi %s609_s14, %s733_s14   ;;  %s566_s13 = sphi %s607_s13, %s732_s13   ;;  %s562_s12 = sphi %s605_s12, %s731_s12  }
   0x5   : > { %s28_s20 = sadd.s32 1, %s578_s16  ;;  %s107_s21 = sadd.s32 1, %s570_s14 }
   0x6   : > { %p30_p0 = scmp.ge.s32.totalorder %s28_s20, 2  ;;  %p117_p1 = scmp.ne.s32.totalorder %s570_s14, %s566_s13 }
   0x7   : > { %p118_p2 = scmp.eq.s32.totalorder %s417_s18, 1  ;;  %p123_p3 = scmp.ne.s32.totalorder %s566_s13, %s562_s12 }
   0x8   : > { %s737_s20 = smov (%p30_p0, %s28_s20), 0  ;;  %p124_p5 = scmp.eq.s32.totalorder %s418_s19, 1 }
   0x9   : > { %p645_p4 = por %p118_p2, %p117_p1  ;;  %s102_s23 = ssub.s32 %s578_s16, %s737_s20 }
   0xa   : > { %p421_p6 = scmp.ge.s32.totalorder %s582_s17, 1  ;;  %p105_p7 = scmp.eq.s32.totalorder %s102_s23, 0 }
   0xb   : > { %p652_p8 = por %p124_p5, %p123_p3  ;;  %p161_p9 = scmp.lt.s32.totalorder %s582_s17, 3 }
   0xc   : > { %s658_s25 = scalar_select %p105_p7, %s570_s14, %s107_s21  }
   0xd   : > { %p162_p10 = pnand %p421_p6, %p161_p9 }
   0xe   : > { %p190_p11 = scmp.lt.s32.totalorder (!%p162_p10), %s574_s15, 1  ;;  %s186_s21 = sand.u32 (!%p162_p10), 1, %s566_s13  }
   0xf   : > { %165 = sbr.rel (%p162_p10) target bundleno = 364 (0x16c), region = 32  ;;  %s422_s23 = sshll.u32 (!%p162_p10), %s186_s21, 3 }
  0x10   : > { %s429_s26 = sshll.u32 (!%p162_p10), %s574_s15, 7  ;;  %s188_s27 = scalar_lea.vmem (!%p162_p10), [#allocation2], %s422_s23 }
  0x11   : > { %s343_s28 = sshll.u32 (!%p162_p10), %s188_s27, 4  ;;  %s685_s4 = scalar_lea.hbm (!%p162_p10), %s728_s3, %s429_s26  ;;  %s344_s28 = int_to_ptr.vmem [resolvable:$true] %s343_s28 }
  0x12   : > { %s506_s6 = scalar_lea.vmem (!%p162_p10), %s344_s28, 128  ;;  %s584_s7 = smov (!%p162_p10), [#allocation2]  }
  0x13   : > { %p507_p12 = scmp.ne.s32.totalorder (!%p162_p10), %s344_s28, %s506_s6 }
  0x14   : > { %v204_v0 = vld [vmem:[%s726_s1 + $0x18] sm:$0xff]  ;;  %v203_v1 = vld [vmem:[%s726_s1 + $0x10] sm:$0xff]  ;;  %v202_v2 = vld [vmem:[%s726_s1 + $0x8] sm:$0xff]  ;;  %s191_s5 = scalar_select %p190_p11, %s574_s15, 1  ;;  %vm212_vm0 = vcmask 261120   ;;  %vm326_vm1 = vcmask 130048  }
  0x15   : > { %439 = vmatprep.subr.mxu0 %v204_v0  ;;  %v201_v3 = vld [vmem:[%s726_s1] sm:$0xff]  ;;  %p508_p13 = pnand %p507_p12, %p645_p4 }
  0x16   : > { %440 = vmatpush3.msra.mxu0 %v204_v0  ;;  %s432_s8 = sshll.u32 %s191_s5, 4  ;;  %v425_v7 = vld [vmem:[%s727_s2] ss:$0 sm:$0xff]  ;;  %s329_s5 = scalar_lea.sflag [#allocation3], %s186_s21 }
  0x17   : > { %441 = vmatprep.subr.mxu0 %v203_v1  ;;  %s197_s11 = scalar_lea.vmem %s725_s0, %s432_s8  ;;  %p509_p0 = pneg %p508_p13 }
  0x18   : > { %442 = vmatpush3.msra.mxu0 %v203_v1  ;;  %v199_v4 = vld [vmem:[%s197_s11] sm:$0xff]  ;;  %v200_v5 = vld [vmem:[%s197_s11 + $0x8] sm:$0xff]  ;;  %s510_s8 = sshll.u32 %s584_s7, 4  ;;  %s511_s8 = int_to_ptr.vmem [resolvable:$false] %s510_s8 }
  0x19   : > { %443 = vmatprep.subr.mxu0 %v202_v2  ;;  %447 = vmatprep.mubr.msk.f32.mxu0 %vm212_vm0, %v199_v4  ;;  %s512_s15 = scalar_lea.vmem %s511_s8, 256  ;;  %p513_p1 = scmp.lt.s32.totalorder %s344_s28, %s511_s8 }
  0x1a   : > { %444 = vmatpush3.msra.mxu0 %v202_v2  ;;  %p514_p2 = scmp.lt.s32.totalorder %s512_s15, %s506_s6 }
  0x1b   : > { %445 = vmatprep.subr.mxu0 %v201_v3 }
  0x1c   : > { %446 = vmatpush3.msra.mxu0 %v201_v3  ;;  %p515_p3 = por %p514_p2, %p513_p1 }
  0x1d   : > { %448 = vmatmul.mubr.msk.f32.vlgmr.msra.gmra.mxu0 %vm212_vm0, %v200_v5 }
  0x1e   : > { %p516_p5 = pnand %p515_p3, %p509_p0 }
  0xdd   : > { %v449_v6 = vpop.f32.mrf.mxu0 }
  0xde   : > { %v291_v10 = vadd.f32 %v449_v6, %v425_v7 }
  0xdf   : > { %v285_v8 = vpop.f32.mrf.mxu0 }
  0xe0   : > { %v286_v9 = vadd.f32 %v425_v7, %v285_v8 }
  0xe2   : > { %294 = vxpose.xlu0.b32.start [1/2] (short) (narrow) %v286_v9, 8 }
  0xe6   : > { %295 = vxpose.xlu0.b32.end [2/2] (short) (narrow) %v291_v10, 8 }
 0x15e   : > { %v310_v11 = vpop.trf.xlu0 }
 0x15f   : > { %327 = vst.msk [vmem:[%s188_s27] sm:$0xff] %vm326_vm1, %v310_v11 }
 0x160   : > { %519 = shalt.err (!%p516_p5)
}
 0x161   : > { %s520_s9 = scalar_lea.hbm %s685_s4, 128  ;;  %s524_s18 = scalar_lea.hbm %s728_s3, 256 }
 0x162   : > { %p521_p6 = scmp.ne.s32.totalorder %s685_s4, %s520_s9  ;;  %p525_p10 = scmp.lt.s32.totalorder %s685_s4, %s728_s3 }
 0x163   : > { %p526_p11 = scmp.lt.s32.totalorder %s524_s18, %s520_s9 }
 0x164   : > { %p522_p7 = pnand %p521_p6, %p645_p4 }
 0x165   : > { %p527_p12 = por %p526_p11, %p525_p10 }
 0x166   : > { %p523_p9 = pneg %p522_p7 }
 0x168   : > { %p528_p13 = pnand %p527_p12, %p523_p9 }
 0x16a   : > { %531 = shalt.err (!%p528_p13)
}
 0x16b   : > { %450 = dma.vmem_to_hbm [thread:$0]  (%p645_p4), %s344_s28, 128, %s685_s4, %s329_s5  }
 0x16c PF: > { %p456_p0 = scmp.ge.s32.totalorder %s582_s17, 2  ;;  %s355_s23 = sand.u32 1, %s562_s12  }
 0x16d   : > { %s356_s26 = scalar_lea.sflag [#allocation3], %s355_s23 }
 0x16e   : > { %p453_p1 = pnand %p456_p0, %p652_p8 }
 0x170   : > { %p454_p2 = pneg %p453_p1 }
 0x172   : > { %557 = dma.done.wait (%p454_p2), %s356_s26, 128  }
 0x173   : > { %559 = vsyncadd (%p454_p2), %s356_s26, 4294967168  ;;  %s16_s17 = sadd.s32 1, %s582_s17   ;;  %s731_s12 = smov %s566_s13 }
 0x174   : > { %p13_p3 = scmp.ge.s32.totalorder %s16_s17, 4   ;;  %s732_s13 = smov %s570_s14 }
 0x175   : > { %s733_s14 = smov %s658_s25  ;;  %s734_s15 = smov %s578_s16 }
 0x176   : > { %s735_s16 = smov %s737_s20  ;;  %15 = sbr.rel (!%p13_p3) target bundleno = 4 (0x4), region = 67 }
 0x17b   :  { %361 = vsyncpa [#allocation3], 1 }
 0x17c   :  { %363 = vsyncpa [#allocation3 + $0x1], 1 }

</bundles_post_ra>
